<compile_context>
chip_gen: v5e
topology: v5e:2x2
jax: 0.10.0
libtpu: 0.0.40
codegen_flags: <defaults>
</compile_context>

<pallas_src>
import jax
import jax.numpy as jnp
from jax.experimental import pallas as pl
from jax.experimental.pallas import tpu as pltpu


def _round_up(x, m):
    return ((x + m - 1) // m) * m


def _ffn_kernel(x_ref, w1_ref, b1_ref, w2_ref, b2_ref, o_ref, h_ref):
    # x_ref:  (tm, Cp)  rows of the flattened, channel-padded input
    # w1_ref: (Cp, Cp)  conv1 weight, pre-transposed (in, out), resident
    # b1_ref: (1, Cp)   f32
    # w2_ref: (Cp, Cp)  conv2 weight, pre-transposed (in, out), resident
    # b2_ref: (1, Cp)   f32
    # h_ref:  (tm, Cp)  f32 VMEM scratch for the intermediate activation
    h = jnp.dot(x_ref[...], w1_ref[...], preferred_element_type=jnp.float32)
    h = jnp.maximum(h + b1_ref[...], 0.0)      # bias + ReLU in f32 (dropout1 = identity)
    h_ref[...] = h
    y = jnp.dot(h_ref[...].astype(w2_ref.dtype), w2_ref[...],
                preferred_element_type=jnp.float32) + b2_ref[...]
    o_ref[...] = y.astype(o_ref.dtype)         # dropout2 = identity (eval mode)


def pointwise_feedforward(x, w1, b1, w2, b2, *, tm=None, compute_dtype=None):
    """x: (N, L, C); w1/w2: PyTorch Conv1d weights (C_out, C_in, 1); b1/b2: (C,).

    compute_dtype: optional MXU dtype (e.g. jnp.bfloat16 on v6e/v7x).
    """
    N, L, C = x.shape
    M = N * L
    out_dtype = x.dtype
    cdt = jnp.dtype(compute_dtype) if compute_dtype is not None else jnp.dtype(x.dtype)

    # Fixed row tile (memory-bound kernel: ~512-row tiles hit ~85% of HBM
    # roofline); don't over-pad tiny inputs.
    if tm is None:
        tm = 1024 if cdt.itemsize <= 2 else 512
    tm = min(tm, _round_up(M, 8))
    Mp = _round_up(M, tm)          # pad rows -> grid = Mp // tm, no dropped tail
    Cp = _round_up(C, 128)         # lane-dense last dim

    # Channel-last 2-D slab, zero-padded to (Mp, Cp).
    x2d = jnp.zeros((Mp, Cp), cdt).at[:M, :C].set(x.reshape(M, C).astype(cdt))

    # Conv1d weights (C_out, C_in, 1) -> (C_in, C_out), zero-padded. Zero rows/
    # cols make the padded channels contribute exactly 0, so slicing the output
    # back to (:M, :C) is exact.
    w1_t = jnp.zeros((Cp, Cp), cdt).at[:C, :C].set(jnp.transpose(w1[:, :, 0]).astype(cdt))
    w2_t = jnp.zeros((Cp, Cp), cdt).at[:C, :C].set(jnp.transpose(w2[:, :, 0]).astype(cdt))
    b1_r = jnp.zeros((1, Cp), jnp.float32).at[0, :C].set(b1.astype(jnp.float32))
    b2_r = jnp.zeros((1, Cp), jnp.float32).at[0, :C].set(b2.astype(jnp.float32))

    grid = (Mp // tm,)

    # Explicit VMEM budget: x + out double-buffered, h scratch, weights/biases
    # single-buffered. Capped at 64 MiB so the same kernel fits v7x VMEM.
    vmem_need = (2 * tm * Cp * cdt.itemsize                       # x (2 bufs)
                 + 2 * tm * Cp * jnp.dtype(out_dtype).itemsize    # out (2 bufs)
                 + tm * Cp * 4                                    # h scratch
                 + 2 * Cp * Cp * cdt.itemsize                     # weights (1 buf each)
                 + 2 * Cp * 4)                                    # biases
    vmem_limit = int(min(64 * 1024 * 1024, vmem_need + 8 * 1024 * 1024))

    cost = pl.CostEstimate(
        flops=4 * M * C * C,                                       # two matmuls
        transcendentals=0,
        bytes_accessed=(2 * M * C * jnp.dtype(out_dtype).itemsize  # read x + write y
                        + 2 * C * C * cdt.itemsize                 # weights
                        + 2 * C * 4))                              # biases

    resident = dict(pipeline_mode=pl.Buffered(1))  # block index is constant -> 1 buffer

    out2d = pl.pallas_call(
        _ffn_kernel,
        out_shape=jax.ShapeDtypeStruct((Mp, Cp), out_dtype),
        grid_spec=pltpu.PrefetchScalarGridSpec(
            num_scalar_prefetch=0,
            grid=grid,
            in_specs=[
                pl.BlockSpec((tm, Cp), lambda i: (i, 0)),              # x rows (streamed)
                pl.BlockSpec((Cp, Cp), lambda i: (0, 0), **resident),  # W1^T
                pl.BlockSpec((1, Cp), lambda i: (0, 0), **resident),   # b1
                pl.BlockSpec((Cp, Cp), lambda i: (0, 0), **resident),  # W2^T
                pl.BlockSpec((1, Cp), lambda i: (0, 0), **resident),   # b2
            ],
            out_specs=pl.BlockSpec((tm, Cp), lambda i: (i, 0)),
            scratch_shapes=[pltpu.VMEM((tm, Cp), jnp.float32)],
        ),
        compiler_params=pltpu.CompilerParams(
            dimension_semantics=("parallel",),
            vmem_limit_bytes=vmem_limit),
        cost_estimate=cost,
    )(x2d, w1_t, b1_r, w2_t, b2_r)

    return out2d[:M, :C].reshape(N, L, C)


def _reference(x, w1, b1, w2, b2):
    # Pure-JAX reference of the PyTorch forward (eval mode).
    h = jnp.einsum("nlc,oc->nlo", x, w1[:, :, 0]) + b1
    h = jnp.maximum(h, 0.0)
    y = jnp.einsum("nlc,oc->nlo", h, w2[:, :, 0]) + b2
    return y


if __name__ == "__main__":
    # Small shapes: batch=2, seq=8, hidden=32  (module input is (N, L, C))
    N, L, C = 2, 8, 32
    key = jax.random.PRNGKey(0)
    kx, k1, k2, k3, k4 = jax.random.split(key, 5)

    x = jax.random.normal(kx, (N, L, C), dtype=jnp.float32)

    # Deterministic Conv1d-style init: uniform(-1/sqrt(fan_in), 1/sqrt(fan_in))
    bound = 1.0 / (C ** 0.5)
    w1 = jax.random.uniform(k1, (C, C, 1), jnp.float32, -bound, bound)
    b1 = jax.random.uniform(k2, (C,), jnp.float32, -bound, bound)
    w2 = jax.random.uniform(k3, (C, C, 1), jnp.float32, -bound, bound)
    b2 = jax.random.uniform(k4, (C,), jnp.float32, -bound, bound)

    ref = _reference(x, w1, b1, w2, b2)

    # f32 path (exact vs reference).
    out = jax.block_until_ready(pointwise_feedforward(x, w1, b1, w2, b2))
    assert out.shape == (N, L, C)
    assert jnp.allclose(out, ref, atol=1e-5, rtol=1e-5), "f32 mismatch vs reference"

    # bf16 MXU path (v6e/v7x recommendation); f32 accumulate, looser tolerance.
    out_bf16 = jax.block_until_ready(
        pointwise_feedforward(x, w1, b1, w2, b2, compute_dtype=jnp.bfloat16))
    assert jnp.allclose(out_bf16, ref, atol=1e-1, rtol=1e-1), "bf16 mismatch vs reference"

    print("KERNEL_OK")
</pallas_src>

<mosaic_0001>
module attributes {stable_mosaic.version = 11 : i64} {
  func.func @_ffn_kernel(%arg0: i32, %arg1: memref<16x128xf32, #tpu.memory_space<vmem>>, %arg2: memref<128x128xf32, #tpu.memory_space<vmem>>, %arg3: memref<1x128xf32, #tpu.memory_space<vmem>>, %arg4: memref<128x128xf32, #tpu.memory_space<vmem>>, %arg5: memref<1x128xf32, #tpu.memory_space<vmem>>, %arg6: memref<16x128xf32, #tpu.memory_space<vmem>>, %arg7: memref<16x128xf32, #tpu.memory_space<vmem>>) attributes {dimension_semantics = [#tpu.dimension_semantics<parallel>], iteration_bounds = array<i64: 1>, scalar_prefetch = 0 : i64, scratch_operands = 1 : i64, tpu.core_type = #tpu.core_type<tc>, window_params = [{transform_indices = @transform_0, window_bounds = array<i64: 16, 128>}, {pipeline_mode = #tpu.pipeline_mode<synchronous>, transform_indices = @transform_1, window_bounds = array<i64: 128, 128>}, {pipeline_mode = #tpu.pipeline_mode<synchronous>, transform_indices = @transform_2, window_bounds = array<i64: 1, 128>}, {pipeline_mode = #tpu.pipeline_mode<synchronous>, transform_indices = @transform_3, window_bounds = array<i64: 128, 128>}, {pipeline_mode = #tpu.pipeline_mode<synchronous>, transform_indices = @transform_4, window_bounds = array<i64: 1, 128>}, {transform_indices = @transform_5, window_bounds = array<i64: 16, 128>}]} {
    %c0 = arith.constant 0 : index
    %c0_0 = arith.constant 0 : index
    %0 = vector.load %arg1[%c0, %c0_0] : memref<16x128xf32, #tpu.memory_space<vmem>>, vector<16x128xf32>
    %c0_1 = arith.constant 0 : index
    %c0_2 = arith.constant 0 : index
    %1 = vector.load %arg2[%c0_1, %c0_2] : memref<128x128xf32, #tpu.memory_space<vmem>>, vector<128x128xf32>
    %cst = arith.constant dense<0.000000e+00> : vector<16x128xf32>
    %2 = tpu.matmul %0, %1, %cst {dimension_numbers = #tpu.dot_dimension_numbers<[1], [0], [0], [1], [0, 0, 1, 1], [], []>} : vector<16x128xf32>, vector<128x128xf32>, vector<16x128xf32> -> vector<16x128xf32>
    %c0_3 = arith.constant 0 : index
    %c0_4 = arith.constant 0 : index
    %3 = vector.load %arg3[%c0_3, %c0_4] : memref<1x128xf32, #tpu.memory_space<vmem>>, vector<1x128xf32>
    %4 = vector.broadcast %3 : vector<1x128xf32> to vector<16x128xf32>
    %5 = arith.addf %2, %4 : vector<16x128xf32>
    %cst_5 = arith.constant 0.000000e+00 : f32
    %6 = vector.broadcast %cst_5 : f32 to vector<16x128xf32>
    %7 = arith.maximumf %5, %6 : vector<16x128xf32>
    %c0_6 = arith.constant 0 : index
    %c0_7 = arith.constant 0 : index
    %8 = vector.load %arg7[%c0_6, %c0_7] : memref<16x128xf32, #tpu.memory_space<vmem>>, vector<16x128xf32>
    tpu.vector_store %arg7[%c0_6, %c0_7], %7 {strides = array<i32>} : memref<16x128xf32, #tpu.memory_space<vmem>>, vector<16x128xf32>,
    %c0_8 = arith.constant 0 : index
    %c0_9 = arith.constant 0 : index
    %9 = vector.load %arg7[%c0_8, %c0_9] : memref<16x128xf32, #tpu.memory_space<vmem>>, vector<16x128xf32>
    %c0_10 = arith.constant 0 : index
    %c0_11 = arith.constant 0 : index
    %10 = vector.load %arg4[%c0_10, %c0_11] : memref<128x128xf32, #tpu.memory_space<vmem>>, vector<128x128xf32>
    %cst_12 = arith.constant dense<0.000000e+00> : vector<16x128xf32>
    %11 = tpu.matmul %9, %10, %cst_12 {dimension_numbers = #tpu.dot_dimension_numbers<[1], [0], [0], [1], [0, 0, 1, 1], [], []>} : vector<16x128xf32>, vector<128x128xf32>, vector<16x128xf32> -> vector<16x128xf32>
    %c0_13 = arith.constant 0 : index
    %c0_14 = arith.constant 0 : index
    %12 = vector.load %arg5[%c0_13, %c0_14] : memref<1x128xf32, #tpu.memory_space<vmem>>, vector<1x128xf32>
    %13 = vector.broadcast %12 : vector<1x128xf32> to vector<16x128xf32>
    %14 = arith.addf %11, %13 : vector<16x128xf32>
    %c0_15 = arith.constant 0 : index
    %c0_16 = arith.constant 0 : index
    %15 = vector.load %arg6[%c0_15, %c0_16] : memref<16x128xf32, #tpu.memory_space<vmem>>, vector<16x128xf32>
    tpu.vector_store %arg6[%c0_15, %c0_16], %14 {strides = array<i32>} : memref<16x128xf32, #tpu.memory_space<vmem>>, vector<16x128xf32>,
    return
  }
  func.func @transform_0(%arg0: i32) -> (i32, i32) {
    %c0_i32 = arith.constant 0 : i32
    %c0_i32_0 = arith.constant 0 : i32
    return %arg0, %c0_i32 : i32, i32
  }
  func.func @transform_1(%arg0: i32) -> (i32, i32) {
    %c0_i32 = arith.constant 0 : i32
    %c0_i32_0 = arith.constant 0 : i32
    %c0_i32_1 = arith.constant 0 : i32
    return %c0_i32, %c0_i32_0 : i32, i32
  }
  func.func @transform_2(%arg0: i32) -> (i32, i32) {
    %c0_i32 = arith.constant 0 : i32
    %c0_i32_0 = arith.constant 0 : i32
    %c0_i32_1 = arith.constant 0 : i32
    return %c0_i32, %c0_i32_0 : i32, i32
  }
  func.func @transform_3(%arg0: i32) -> (i32, i32) {
    %c0_i32 = arith.constant 0 : i32
    %c0_i32_0 = arith.constant 0 : i32
    %c0_i32_1 = arith.constant 0 : i32
    return %c0_i32, %c0_i32_0 : i32, i32
  }
  func.func @transform_4(%arg0: i32) -> (i32, i32) {
    %c0_i32 = arith.constant 0 : i32
    %c0_i32_0 = arith.constant 0 : i32
    %c0_i32_1 = arith.constant 0 : i32
    return %c0_i32, %c0_i32_0 : i32, i32
  }
  func.func @transform_5(%arg0: i32) -> (i32, i32) {
    %c0_i32 = arith.constant 0 : i32
    %c0_i32_0 = arith.constant 0 : i32
    return %arg0, %c0_i32 : i32, i32
  }
}

</mosaic_0001>

<bundles_post_ra>
// kernel: tpu_custom_call.1
= control target key start
LH: loop header
LB: loop body
LE: loop exit
PB: predicated region body
PF: predicated region fallthrough
CT: control target
= control target key end

     0   :  { %10 = vsyncpa [#allocation4], 0  ;;  %s392_s0 = inlined_call_operand.hbm [shape: f32[16,128], index: 0, kind: input, shape index: {}]   ;;  %s393_s1 = inlined_call_operand.hbm [shape: f32[128,128], index: 1, kind: input, shape index: {}]   ;;  %s394_s2 = inlined_call_operand.vmem [shape: f32[1,128], index: 2, kind: input, shape index: {}]   ;;  %s395_s3 = inlined_call_operand.hbm [shape: f32[128,128], index: 3, kind: input, shape index: {}]   ;;  %s396_s4 = inlined_call_operand.vmem [shape: f32[1,128], index: 4, kind: input, shape index: {}]   ;;  %s397_s5 = inlined_call_operand.hbm [shape: f32[16,128], index: 5, kind: output, shape index: {}]  }
   0x1   :  { %11 = vsyncpa [#allocation7], 0 }
   0x2   :  { %12 = vsyncpa [#allocation5], 0  ;;  %s30_s20 = sshll.u32 %s393_s1, 4  ;;  %s326_s21 = smov [#allocation6]   ;;  %s31_s20 = int_to_ptr.hbm [resolvable:$true] %s30_s20 }
   0x3   :  { %s32_s22 = sshll.u32 %s326_s21, 4  ;;  %s17_s25 = sshll.u32 %s392_s0, 4  ;;  %s33_s22 = int_to_ptr.vmem [resolvable:$true] %s32_s22  ;;  %s18_s25 = int_to_ptr.hbm [resolvable:$true] %s17_s25 }
   0x4   :  { %s327_s26 = smov 128   ;;  %s328_s27 = smov 8  }
   0x5   :  { %38 = dma.hbm_to_vmem [thread:$0]  %s31_s20, 2048, %s33_s22, [#allocation7], %s327_s26, %s327_s26, %s328_s27  }
   0x6   :  { %s329_s28 = smov [#allocation3]   ;;  %s45_s1 = sshll.u32 %s395_s3, 4  ;;  %s46_s1 = int_to_ptr.hbm [resolvable:$true] %s45_s1 }
   0x7   :  { %s19_s29 = sshll.u32 %s329_s28, 4  ;;  %s330_s0 = smov [#allocation8]   ;;  %s20_s29 = int_to_ptr.vmem [resolvable:$true] %s19_s29 }
   0x8   :  { %25 = dma.hbm_to_vmem [thread:$0]  %s18_s25, 256, %s20_s29, [#allocation4], %s327_s26, %s327_s26, %s328_s27  }
   0x9   :  { %s47_s7 = sshll.u32 %s330_s0, 4  ;;  %s48_s7 = int_to_ptr.vmem [resolvable:$true] %s47_s7 }
   0xa   :  { %53 = dma.hbm_to_vmem [thread:$0]  %s46_s1, 2048, %s48_s7, [#allocation7], %s327_s26, %s327_s26, %s328_s27  }
   0xb   :  { %320 = dma.done.wait [#allocation4], 256  }
   0xc   :  { %321 = vsyncadd [#allocation4], 4294967040 }
   0xd   :  { %322 = dma.done.wait [#allocation7], 4096  }
   0xe   :  { %323 = vsyncadd [#allocation7], 4294963200  ;;  %v85_v0 = vld [vmem:[#allocation6 + $0x78] sm:$0xff]  ;;  %v84_v1 = vld [vmem:[#allocation6 + $0x70] sm:$0xff]  ;;  %s331_s11 = smov [#allocation9]  }
   0xf   :  { %184 = vmatpush.msra.mxu2 %v85_v0  ;;  %90 = vmatpush.msra.mxu0 %v85_v0  ;;  %v83_v2 = vld [vmem:[#allocation6 + $0x68] sm:$0xff]  ;;  %v82_v3 = vld [vmem:[#allocation6 + $0x60] sm:$0xff]  ;;  %v81_v4 = vld [vmem:[#allocation6 + $0x58] sm:$0xff]  ;;  %s168_s12 = sshll.u32 %s331_s11, 4  ;;  %s169_s12 = int_to_ptr.vmem [resolvable:$true] %s168_s12 }
  0x10   :  { %v134_v5 = vld [vmem:[#allocation8 + $0x78] sm:$0xff]  ;;  %v133_v6 = vld [vmem:[#allocation8 + $0x70] sm:$0xff]  ;;  %v132_v8 = vld [vmem:[#allocation8 + $0x68] sm:$0xff] }
  0x11   :  { %185 = vmatpush.msra.mxu2 %v84_v1  ;;  %91 = vmatpush.msra.mxu0 %v84_v1  ;;  %v80_v7 = vld [vmem:[#allocation6 + $0x50] sm:$0xff]  ;;  %v79_v9 = vld [vmem:[#allocation6 + $0x48] sm:$0xff]  ;;  %v131_v10 = vld [vmem:[#allocation8 + $0x60] sm:$0xff] }
  0x12   :  { %200 = vmatpush.msra.mxu3 %v134_v5  ;;  %139 = vmatpush.msra.mxu1 %v134_v5  ;;  %v78_v11 = vld [vmem:[#allocation6 + $0x40] sm:$0xff]  ;;  %v130_v12 = vld [vmem:[#allocation8 + $0x58] sm:$0xff]  ;;  %v129_v14 = vld [vmem:[#allocation8 + $0x50] sm:$0xff] }
  0x13   :  { %186 = vmatpush.msra.mxu2 %v83_v2  ;;  %92 = vmatpush.msra.mxu0 %v83_v2  ;;  %v77_v13 = vld [vmem:[#allocation6 + $0x38] sm:$0xff]  ;;  %v76_v15 = vld [vmem:[#allocation6 + $0x30] sm:$0xff]  ;;  %v128_v16 = vld [vmem:[#allocation8 + $0x48] sm:$0xff] }
  0x14   :  { %201 = vmatpush.msra.mxu3 %v133_v6  ;;  %140 = vmatpush.msra.mxu1 %v133_v6  ;;  %v75_v17 = vld [vmem:[#allocation6 + $0x28] sm:$0xff]  ;;  %v127_v18 = vld [vmem:[#allocation8 + $0x40] sm:$0xff]  ;;  %v126_v20 = vld [vmem:[#allocation8 + $0x38] sm:$0xff] }
  0x15   :  { %187 = vmatpush.msra.mxu2 %v82_v3  ;;  %93 = vmatpush.msra.mxu0 %v82_v3  ;;  %v74_v19 = vld [vmem:[#allocation6 + $0x20] sm:$0xff]  ;;  %v73_v21 = vld [vmem:[#allocation6 + $0x18] sm:$0xff]  ;;  %v125_v22 = vld [vmem:[#allocation8 + $0x30] sm:$0xff] }
  0x16   :  { %202 = vmatpush.msra.mxu3 %v132_v8  ;;  %141 = vmatpush.msra.mxu1 %v132_v8  ;;  %v72_v23 = vld [vmem:[#allocation6 + $0x10] sm:$0xff]  ;;  %v124_v24 = vld [vmem:[#allocation8 + $0x28] sm:$0xff]  ;;  %v123_v26 = vld [vmem:[#allocation8 + $0x20] sm:$0xff] }
  0x17   :  { %188 = vmatpush.msra.mxu2 %v81_v4  ;;  %94 = vmatpush.msra.mxu0 %v81_v4  ;;  %v71_v25 = vld [vmem:[#allocation6 + $0x8] sm:$0xff]  ;;  %v70_v27 = vld [vmem:[#allocation6] sm:$0xff]  ;;  %v69_v28 = vld [vmem:[#allocation3 + $0x8] sm:$0xff] }
  0x18   :  { %203 = vmatpush.msra.mxu3 %v131_v10  ;;  %142 = vmatpush.msra.mxu1 %v131_v10  ;;  %v68_v29 = vld [vmem:[#allocation3] sm:$0xff]  ;;  %v122_v30 = vld [vmem:[#allocation8 + $0x18] sm:$0xff]  ;;  %v120_v32 = vld [vmem:[#allocation8 + $0x8] sm:$0xff] }
  0x19   :  { %189 = vmatpush.msra.mxu2 %v80_v7  ;;  %95 = vmatpush.msra.mxu0 %v80_v7  ;;  %v121_v31 = vld [vmem:[#allocation8 + $0x10] sm:$0xff]  ;;  %v119_v33 = vld [vmem:[#allocation8] sm:$0xff] }
  0x1a   :  { %204 = vmatpush.msra.mxu3 %v130_v12  ;;  %143 = vmatpush.msra.mxu1 %v130_v12  ;;  %v222_v34 = vld [vmem:[%s394_s2] ss:$0 sm:$0xff]  ;;  %s170_s2 = sshll.u32 %s397_s5, 4  ;;  %s171_s2 = int_to_ptr.hbm [resolvable:$true] %s170_s2 }
  0x1b   :  { %190 = vmatpush.msra.mxu2 %v79_v9  ;;  %96 = vmatpush.msra.mxu0 %v79_v9  ;;  %v223_v41 = vld [vmem:[%s396_s4] ss:$0 sm:$0xff] }
  0x1c   :  { %205 = vmatpush.msra.mxu3 %v129_v14  ;;  %144 = vmatpush.msra.mxu1 %v129_v14 }
  0x1d   :  { %191 = vmatpush.msra.mxu2 %v78_v11  ;;  %97 = vmatpush.msra.mxu0 %v78_v11 }
  0x1e   :  { %206 = vmatpush.msra.mxu3 %v128_v16  ;;  %145 = vmatpush.msra.mxu1 %v128_v16 }
  0x1f   :  { %192 = vmatpush.msra.mxu2 %v77_v13  ;;  %98 = vmatpush.msra.mxu0 %v77_v13 }
  0x20   :  { %207 = vmatpush.msra.mxu3 %v127_v18  ;;  %146 = vmatpush.msra.mxu1 %v127_v18 }
  0x21   :  { %193 = vmatpush.msra.mxu2 %v76_v15  ;;  %99 = vmatpush.msra.mxu0 %v76_v15 }
  0x22   :  { %208 = vmatpush.msra.mxu3 %v126_v20  ;;  %147 = vmatpush.msra.mxu1 %v126_v20 }
  0x23   :  { %194 = vmatpush.msra.mxu2 %v75_v17  ;;  %100 = vmatpush.msra.mxu0 %v75_v17 }
  0x24   :  { %209 = vmatpush.msra.mxu3 %v125_v22  ;;  %148 = vmatpush.msra.mxu1 %v125_v22 }
  0x25   :  { %195 = vmatpush.msra.mxu2 %v74_v19  ;;  %101 = vmatpush.msra.mxu0 %v74_v19 }
  0x26   :  { %210 = vmatpush.msra.mxu3 %v124_v24  ;;  %149 = vmatpush.msra.mxu1 %v124_v24 }
  0x27   :  { %196 = vmatpush.msra.mxu2 %v73_v21  ;;  %102 = vmatpush.msra.mxu0 %v73_v21 }
  0x28   :  { %211 = vmatpush.msra.mxu3 %v123_v26  ;;  %150 = vmatpush.msra.mxu1 %v123_v26 }
  0x29   :  { %197 = vmatpush.msra.mxu2 %v72_v23  ;;  %103 = vmatpush.msra.mxu0 %v72_v23 }
  0x2a   :  { %212 = vmatpush.msra.mxu3 %v122_v30  ;;  %151 = vmatpush.msra.mxu1 %v122_v30 }
  0x2b   :  { %198 = vmatpush.msra.mxu2 %v71_v25  ;;  %104 = vmatpush.msra.mxu0 %v71_v25 }
  0x2c   :  { %213 = vmatpush.msra.mxu3 %v121_v31  ;;  %152 = vmatpush.msra.mxu1 %v121_v31 }
  0x2d   :  { %199 = vmatpush.msra.mxu2 %v70_v27  ;;  %105 = vmatpush.msra.mxu0 %v70_v27 }
  0x2e   :  { %109 = vmatmul.f32.vlgmr.msra.gmra.mxu2 %v69_v28  ;;  %106 = vmatmul.f32.vlgmr.msra.gmra.mxu0 %v68_v29 }
  0x2f   :  { %214 = vmatpush.msra.mxu3 %v120_v32  ;;  %153 = vmatpush.msra.mxu1 %v120_v32 }
  0x31   :  { %215 = vmatpush.msra.mxu3 %v119_v33  ;;  %154 = vmatpush.msra.mxu1 %v119_v33 }
  0xab   :  { %v107_v35 = vpop.f32.mrf.mxu0 }
  0xac   :  { %v108_v36 = vadd.f32 %v222_v34, %v107_v35 }
  0xae   :  { %v113_v37 = vmax.f32 %v108_v36, 0.0 }
  0xb0   :  { %155 = vmatmul.f32.vlgmr.msra.gmra.mxu1 %v113_v37 }
  0xb1   :  { %v110_v38 = vpop.f32.mrf.mxu2 }
  0xb2   :  { %v111_v39 = vadd.f32 %v222_v34, %v110_v38 }
  0xb4   :  { %v114_v40 = vmax.f32 %v111_v39, 0.0 }
  0xb6   :  { %158 = vmatmul.f32.vlgmr.msra.gmra.mxu3 %v114_v40 }
 0x12d   :  { %v156_v42 = vpop.f32.mrf.mxu1 }
 0x12e   :  { %v157_v43 = vadd.f32 %v223_v41, %v156_v42 }
 0x130   :  { %162 = vst [vmem:[#allocation9] sm:$0xff] %v157_v43 }
 0x139   :  { %v159_v44 = vpop.f32.mrf.mxu3 }
 0x13a   :  { %v160_v45 = vadd.f32 %v223_v41, %v159_v44 }
 0x13c   :  { %163 = vst [vmem:[#allocation9 + $0x8] sm:$0xff] %v160_v45 }
 0x13d   :  { %176 = dma.vmem_to_hbm [thread:$0]  %s169_s12, 256, %s171_s2, [#allocation5], %s327_s26, %s327_s26, %s328_s27  }
 0x13e   :  { %324 = dma.done.wait [#allocation5], 256  }
 0x13f   :  { %325 = vsyncadd [#allocation5], 4294967040 }
 0x140   :  { %181 = vsyncpa [#allocation4], 1 }
 0x141   :  { %182 = vsyncpa [#allocation7], 1 }
 0x142   :  { %183 = vsyncpa [#allocation5], 1 }

</bundles_post_ra>
